<compile_context>
chip_gen: v7x
topology: tpu7x:2x2x1
jax: 0.10.0
libtpu: 0.0.40
codegen_flags: <defaults>
</compile_context>

<pallas_src>
import jax
import jax.numpy as jnp
from jax.experimental import pallas as pl
from jax.experimental.pallas import tpu as pltpu

# These globals are referenced (but not defined) in the reference module; fix them here.
MAXIMUM_INVENTORY = 100
BIN_SIZE = 10
BIN_MAX = MAXIMUM_INVENTORY // BIN_SIZE  # = 10

HIDDEN = (64, 128, 32)


def actor_kernel(x_ref,
                 w0_ref, b0_ref,
                 w1_ref, b1_ref,
                 w2_ref, b2_ref,
                 wh_ref, bh_ref,
                 out_ref):
    """Fused MLP backbone + fused (2,32) head + argmax/clamp/round epilogue.

    Produces a lane-dense (2, TB) output tile: row 0 = action index, row 1 = bin.
    """
    wdt = w0_ref.dtype
    x = x_ref[...]

    # Backbone MLP (Linear -> ReLU) x3, MXU with f32 accumulation.
    h = jnp.maximum(
        jnp.dot(x, w0_ref[...], preferred_element_type=jnp.float32) + b0_ref[...], 0.0)
    h = jnp.maximum(
        jnp.dot(h.astype(wdt), w1_ref[...], preferred_element_type=jnp.float32)
        + b1_ref[...], 0.0)
    h = jnp.maximum(
        jnp.dot(h.astype(wdt), w2_ref[...], preferred_element_type=jnp.float32)
        + b2_ref[...], 0.0)

    # Single fused head matmul, lane-dense result (2, TB):
    #   row 0 = act_logit[1] - act_logit[0]   (sigmoid dropped: monotone)
    #   row 1 = raw bin value
    heads = jax.lax.dot_general(
        wh_ref[...], h.astype(wdt),
        dimension_numbers=(((1,), (1,)), ((), ())),
        preferred_element_type=jnp.float32) + bh_ref[...]            # (2, TB) f32

    # torch.argmax ties go to index 0 -> keep strict '>' (here: diff > 0).
    act = jnp.where(heads > 0.0, 1.0, 0.0)                           # valid in row 0
    binv = jnp.round(jnp.clip(heads, 0.0, float(BIN_MAX)))           # valid in row 1

    row = jax.lax.broadcasted_iota(jnp.int32, heads.shape, 0)
    out_ref[...] = jnp.where(row == 0, act, binv).astype(out_ref.dtype)


def _round_up(v, m):
    return ((v + m - 1) // m) * m


def actor_forward(x, params, *, block_b=4096, compute_dtype=jnp.bfloat16):
    """params: list of (W, b) in order [l0, l1, l2, linear_act, linear_bin].

    compute_dtype: bf16 by default (v5e/v6e/v7x MXU-native; dots accumulate in
    f32). Pass jnp.float32 for bit-exact agreement with the f32 reference.
    """
    B, F = x.shape
    (w0, b0), (w1, b1), (w2, b2), (wa, ba), (wb, bb) = params

    # --- Head fusion (wrapper-side, done once); transposed for lane-dense out.
    wh = jnp.concatenate([wa[:, 1:2] - wa[:, 0:1], wb], axis=1).T     # (2, 32)
    bh = jnp.concatenate([ba[:, 1:2] - ba[:, 0:1], bb], axis=1).T     # (2, 1)

    weights = [w0, b0, w1, b1, w2, b2, wh, bh]
    if compute_dtype is not None:
        x = x.astype(compute_dtype)
        weights = [w.astype(compute_dtype) for w in weights]

    # --- Batch tiling -----------------------------------------------------
    # Full batch if small; otherwise a large lane/sublane-aligned tile.
    # For B > MIN_TILE ensure the grid has >= 2 steps so v7x megacore can
    # shard the "parallel" batch axis across both TensorCores.
    MIN_TILE = 256
    if B <= MIN_TILE:
        tb = B
    else:
        half = _round_up((B + 1) // 2, MIN_TILE)
        tb = min(_round_up(block_b, MIN_TILE), half)
    grid = (pl.cdiv(B, tb),)

    x_spec = pl.BlockSpec((tb, F), lambda i: (i, 0))
    out_spec = pl.BlockSpec((2, tb), lambda i: (0, i))                # lane-dense
    w_specs = [pl.BlockSpec(w.shape, lambda i: (0, 0)) for w in weights]

    # --- Cost + VMEM estimates ---------------------------------------------
    itemsize = x.dtype.itemsize
    w_bytes = sum(int(w.size) * w.dtype.itemsize for w in weights)
    flops = 2 * B * (F * 64 + 64 * 128 + 128 * 32 + 32 * 2)
    bytes_accessed = int(x.size) * itemsize + w_bytes + B * 2 * 4

    hid = sum(HIDDEN)
    vmem_est = (2 * tb * F * itemsize          # double-buffered x tile
                + 2 * 2 * tb * 4               # double-buffered out tile
                + 2 * w_bytes                  # VMEM-resident weights (2 bufs)
                + tb * hid * (4 + itemsize)    # f32 activations + casted copies
                + 2 * tb * 4)                  # head tile
    # >=32 MiB raises v5e's 16 MiB scoped default; 48 MiB cap keeps headroom
    # under v7x's 64 MiB physical VMEM.
    vmem_limit = int(min(max(32 << 20, 2 * vmem_est), 48 << 20))

    out_2xb = pl.pallas_call(
        actor_kernel,
        out_shape=jax.ShapeDtypeStruct((2, B), jnp.float32),
        grid=grid,
        in_specs=[x_spec] + w_specs,
        out_specs=out_spec,
        compiler_params=pltpu.CompilerParams(
            dimension_semantics=("parallel",),
            vmem_limit_bytes=vmem_limit),
        cost_estimate=pl.CostEstimate(
            flops=flops, transcendentals=0, bytes_accessed=bytes_accessed),
    )(x, *weights)

    # Final layout fix-up in the wrapper (cheap XLA transpose of a tiny array).
    return out_2xb.T


def actor_reference(x, params):
    """Pure-JAX reference that follows the original torch forward path."""
    (w0, b0), (w1, b1), (w2, b2), (wa, ba), (wb, bb) = params
    h = jnp.maximum(x @ w0 + b0, 0.0)
    h = jnp.maximum(h @ w1 + b1, 0.0)
    h = jnp.maximum(h @ w2 + b2, 0.0)
    act = jax.nn.sigmoid(h @ wa + ba)
    act_idx = jnp.argmax(act, axis=1).astype(jnp.float32)[:, None]
    binv = jnp.clip(jnp.maximum(h @ wb + bb, 0.0), 0.0, float(BIN_MAX))
    return jnp.round(jnp.concatenate([act_idx, binv], axis=1))


def init_params(key, nb_states, hidden=HIDDEN, init_w=0.003):
    """Mirrors the PyTorch initialize_weights logic:
       backbone linears: W ~ U(-1/sqrt(out_features), +1/sqrt(out_features)), b = 0
       heads:            W ~ U(-init_w, +init_w), b ~ torch default U(-1/sqrt(fan_in), .)"""
    keys = jax.random.split(key, 8)
    dims = [nb_states] + list(hidden)
    params = []
    for i in range(len(hidden)):
        v = 1.0 / float(jnp.sqrt(float(dims[i + 1])))  # uses out_features, as in the reference
        W = jax.random.uniform(keys[i], (dims[i], dims[i + 1]), jnp.float32, -v, v)
        b = jnp.zeros((1, dims[i + 1]), jnp.float32)
        params.append((W, b))

    fan_in = hidden[-1]
    b_bound = 1.0 / float(jnp.sqrt(float(fan_in)))
    Wa = jax.random.uniform(keys[3], (hidden[-1], 2), jnp.float32, -init_w, init_w)
    ba = jax.random.uniform(keys[4], (1, 2), jnp.float32, -b_bound, b_bound)
    Wb = jax.random.uniform(keys[5], (hidden[-1], 1), jnp.float32, -init_w, init_w)
    bb = jax.random.uniform(keys[6], (1, 1), jnp.float32, -b_bound, b_bound)
    params.append((Wa, ba))
    params.append((Wb, bb))
    return params


if __name__ == "__main__":
    key = jax.random.PRNGKey(0)
    kx, kp = jax.random.split(key)

    B, nb_states = 8, 16
    x = jax.random.normal(kx, (B, nb_states), jnp.float32)
    params = init_params(kp, nb_states)

    ref = actor_reference(x, params)

    # Exact-match check on the f32 compute path.
    out_f32 = jax.block_until_ready(actor_forward(x, params, compute_dtype=jnp.float32))
    assert out_f32.shape == (B, 2), out_f32.shape
    assert out_f32.dtype == jnp.float32
    assert jnp.array_equal(out_f32, ref), (out_f32, ref)

    # Default bf16 throughput path: decisions can shift by 1 bin near rounding
    # boundaries vs f32, so validate structure/range instead of bit equality.
    out_bf16 = jax.block_until_ready(actor_forward(x, params))
    assert out_bf16.shape == (B, 2), out_bf16.shape
    assert out_bf16.dtype == jnp.float32
    act_col, bin_col = out_bf16[:, 0], out_bf16[:, 1]
    assert bool(jnp.all((act_col == 0.0) | (act_col == 1.0)))
    assert bool(jnp.all((bin_col >= 0.0) & (bin_col <= float(BIN_MAX))))
    assert bool(jnp.all(bin_col == jnp.round(bin_col)))

    print("KERNEL_OK")
</pallas_src>

<mosaic_0001>
module attributes {stable_mosaic.version = 11 : i64} {
  func.func @actor_kernel(%arg0: i32, %arg1: memref<8x16xf32, #tpu.memory_space<vmem>>, %arg2: memref<16x64xf32, #tpu.memory_space<vmem>>, %arg3: memref<1x64xf32, #tpu.memory_space<vmem>>, %arg4: memref<64x128xf32, #tpu.memory_space<vmem>>, %arg5: memref<1x128xf32, #tpu.memory_space<vmem>>, %arg6: memref<128x32xf32, #tpu.memory_space<vmem>>, %arg7: memref<1x32xf32, #tpu.memory_space<vmem>>, %arg8: memref<2x32xf32, #tpu.memory_space<vmem>>, %arg9: memref<2x1xf32, #tpu.memory_space<vmem>>, %arg10: memref<2x8xf32, #tpu.memory_space<vmem>>) attributes {dimension_semantics = [#tpu.dimension_semantics<parallel>], iteration_bounds = array<i64: 1>, scalar_prefetch = 0 : i64, scratch_operands = 0 : i64, tpu.core_type = #tpu.core_type<tc>, window_params = [{transform_indices = @transform_0, window_bounds = array<i64: 8, 16>}, {pipeline_mode = #tpu.pipeline_mode<synchronous>, transform_indices = @transform_1, window_bounds = array<i64: 16, 64>}, {pipeline_mode = #tpu.pipeline_mode<synchronous>, transform_indices = @transform_2, window_bounds = array<i64: 1, 64>}, {pipeline_mode = #tpu.pipeline_mode<synchronous>, transform_indices = @transform_3, window_bounds = array<i64: 64, 128>}, {pipeline_mode = #tpu.pipeline_mode<synchronous>, transform_indices = @transform_4, window_bounds = array<i64: 1, 128>}, {pipeline_mode = #tpu.pipeline_mode<synchronous>, transform_indices = @transform_5, window_bounds = array<i64: 128, 32>}, {pipeline_mode = #tpu.pipeline_mode<synchronous>, transform_indices = @transform_6, window_bounds = array<i64: 1, 32>}, {pipeline_mode = #tpu.pipeline_mode<synchronous>, transform_indices = @transform_7, window_bounds = array<i64: 2, 32>}, {pipeline_mode = #tpu.pipeline_mode<synchronous>, transform_indices = @transform_8, window_bounds = array<i64: 2, 1>}, {transform_indices = @transform_9, window_bounds = array<i64: 2, 8>}]} {
    %c0 = arith.constant 0 : index
    %c0_0 = arith.constant 0 : index
    %0 = vector.load %arg1[%c0, %c0_0] : memref<8x16xf32, #tpu.memory_space<vmem>>, vector<8x16xf32>
    %c0_1 = arith.constant 0 : index
    %c0_2 = arith.constant 0 : index
    %1 = vector.load %arg2[%c0_1, %c0_2] : memref<16x64xf32, #tpu.memory_space<vmem>>, vector<16x64xf32>
    %cst = arith.constant dense<0.000000e+00> : vector<8x64xf32>
    %2 = tpu.matmul %0, %1, %cst {dimension_numbers = #tpu.dot_dimension_numbers<[1], [0], [0], [1], [0, 0, 1, 1], [], []>} : vector<8x16xf32>, vector<16x64xf32>, vector<8x64xf32> -> vector<8x64xf32>
    %c0_3 = arith.constant 0 : index
    %c0_4 = arith.constant 0 : index
    %3 = vector.load %arg3[%c0_3, %c0_4] : memref<1x64xf32, #tpu.memory_space<vmem>>, vector<1x64xf32>
    %4 = vector.broadcast %3 : vector<1x64xf32> to vector<8x64xf32>
    %5 = arith.addf %2, %4 : vector<8x64xf32>
    %cst_5 = arith.constant 0.000000e+00 : f32
    %6 = vector.broadcast %cst_5 : f32 to vector<8x64xf32>
    %7 = arith.maximumf %5, %6 : vector<8x64xf32>
    %c0_6 = arith.constant 0 : index
    %c0_7 = arith.constant 0 : index
    %8 = vector.load %arg4[%c0_6, %c0_7] : memref<64x128xf32, #tpu.memory_space<vmem>>, vector<64x128xf32>
    %cst_8 = arith.constant dense<0.000000e+00> : vector<8x128xf32>
    %9 = tpu.matmul %7, %8, %cst_8 {dimension_numbers = #tpu.dot_dimension_numbers<[1], [0], [0], [1], [0, 0, 1, 1], [], []>} : vector<8x64xf32>, vector<64x128xf32>, vector<8x128xf32> -> vector<8x128xf32>
    %c0_9 = arith.constant 0 : index
    %c0_10 = arith.constant 0 : index
    %10 = vector.load %arg5[%c0_9, %c0_10] : memref<1x128xf32, #tpu.memory_space<vmem>>, vector<1x128xf32>
    %11 = vector.broadcast %10 : vector<1x128xf32> to vector<8x128xf32>
    %12 = arith.addf %9, %11 : vector<8x128xf32>
    %cst_11 = arith.constant 0.000000e+00 : f32
    %13 = vector.broadcast %cst_11 : f32 to vector<8x128xf32>
    %14 = arith.maximumf %12, %13 : vector<8x128xf32>
    %c0_12 = arith.constant 0 : index
    %c0_13 = arith.constant 0 : index
    %15 = vector.load %arg6[%c0_12, %c0_13] : memref<128x32xf32, #tpu.memory_space<vmem>>, vector<128x32xf32>
    %cst_14 = arith.constant dense<0.000000e+00> : vector<8x32xf32>
    %16 = tpu.matmul %14, %15, %cst_14 {dimension_numbers = #tpu.dot_dimension_numbers<[1], [0], [0], [1], [0, 0, 1, 1], [], []>} : vector<8x128xf32>, vector<128x32xf32>, vector<8x32xf32> -> vector<8x32xf32>
    %c0_15 = arith.constant 0 : index
    %c0_16 = arith.constant 0 : index
    %17 = vector.load %arg7[%c0_15, %c0_16] : memref<1x32xf32, #tpu.memory_space<vmem>>, vector<1x32xf32>
    %18 = vector.broadcast %17 : vector<1x32xf32> to vector<8x32xf32>
    %19 = arith.addf %16, %18 : vector<8x32xf32>
    %cst_17 = arith.constant 0.000000e+00 : f32
    %20 = vector.broadcast %cst_17 : f32 to vector<8x32xf32>
    %21 = arith.maximumf %19, %20 : vector<8x32xf32>
    %c0_18 = arith.constant 0 : index
    %c0_19 = arith.constant 0 : index
    %22 = vector.load %arg8[%c0_18, %c0_19] : memref<2x32xf32, #tpu.memory_space<vmem>>, vector<2x32xf32>
    %cst_20 = arith.constant dense<0.000000e+00> : vector<2x8xf32>
    %23 = tpu.matmul %22, %21, %cst_20 {dimension_numbers = #tpu.dot_dimension_numbers<[1], [1], [0], [0], [0, 0, 1, 0], [], []>} : vector<2x32xf32>, vector<8x32xf32>, vector<2x8xf32> -> vector<2x8xf32>
    %c0_21 = arith.constant 0 : index
    %c0_22 = arith.constant 0 : index
    %24 = vector.load %arg9[%c0_21, %c0_22] : memref<2x1xf32, #tpu.memory_space<vmem>>, vector<2x1xf32>
    %25 = vector.broadcast %24 : vector<2x1xf32> to vector<2x8xf32>
    %26 = arith.addf %23, %25 : vector<2x8xf32>
    %cst_23 = arith.constant 0.000000e+00 : f32
    %27 = vector.broadcast %cst_23 : f32 to vector<2x8xf32>
    %28 = arith.cmpf ogt, %26, %27 : vector<2x8xf32>
    %cst_24 = arith.constant 1.000000e+00 : f32
    %cst_25 = arith.constant 0.000000e+00 : f32
    %29 = vector.broadcast %cst_24 : f32 to vector<2x8xf32>
    %30 = vector.broadcast %cst_25 : f32 to vector<2x8xf32>
    %31 = arith.select %28, %29, %30 : vector<2x8xi1>, vector<2x8xf32>
    %cst_26 = arith.constant 0.000000e+00 : f32
    %cst_27 = arith.constant 1.000000e+01 : f32
    %32 = vector.broadcast %cst_26 : f32 to vector<2x8xf32>
    %33 = arith.maximumf %32, %26 : vector<2x8xf32>
    %34 = vector.broadcast %cst_27 : f32 to vector<2x8xf32>
    %35 = arith.minimumf %34, %33 : vector<2x8xf32>
    %36 = math.roundeven %35 : vector<2x8xf32>
    %37 = tpu.iota {dimensions = array<i32: 0>} : vector<2x8xi32>
    %c0_i32 = arith.constant 0 : i32
    %38 = vector.broadcast %c0_i32 : i32 to vector<2x8xi32>
    %39 = arith.cmpi eq, %37, %38 : vector<2x8xi32>
    %40 = arith.select %39, %31, %36 : vector<2x8xi1>, vector<2x8xf32>
    %c0_28 = arith.constant 0 : index
    %c0_29 = arith.constant 0 : index
    %41 = vector.load %arg10[%c0_28, %c0_29] : memref<2x8xf32, #tpu.memory_space<vmem>>, vector<2x8xf32>
    tpu.vector_store %arg10[%c0_28, %c0_29], %40 {strides = array<i32>} : memref<2x8xf32, #tpu.memory_space<vmem>>, vector<2x8xf32>,
    return
  }
  func.func @transform_0(%arg0: i32) -> (i32, i32) {
    %c0_i32 = arith.constant 0 : i32
    %c0_i32_0 = arith.constant 0 : i32
    return %arg0, %c0_i32 : i32, i32
  }
  func.func @transform_1(%arg0: i32) -> (i32, i32) {
    %c0_i32 = arith.constant 0 : i32
    %c0_i32_0 = arith.constant 0 : i32
    %c0_i32_1 = arith.constant 0 : i32
    return %c0_i32, %c0_i32_0 : i32, i32
  }
  func.func @transform_2(%arg0: i32) -> (i32, i32) {
    %c0_i32 = arith.constant 0 : i32
    %c0_i32_0 = arith.constant 0 : i32
    %c0_i32_1 = arith.constant 0 : i32
    return %c0_i32, %c0_i32_0 : i32, i32
  }
  func.func @transform_3(%arg0: i32) -> (i32, i32) {
    %c0_i32 = arith.constant 0 : i32
    %c0_i32_0 = arith.constant 0 : i32
    %c0_i32_1 = arith.constant 0 : i32
    return %c0_i32, %c0_i32_0 : i32, i32
  }
  func.func @transform_4(%arg0: i32) -> (i32, i32) {
    %c0_i32 = arith.constant 0 : i32
    %c0_i32_0 = arith.constant 0 : i32
    %c0_i32_1 = arith.constant 0 : i32
    return %c0_i32, %c0_i32_0 : i32, i32
  }
  func.func @transform_5(%arg0: i32) -> (i32, i32) {
    %c0_i32 = arith.constant 0 : i32
    %c0_i32_0 = arith.constant 0 : i32
    %c0_i32_1 = arith.constant 0 : i32
    return %c0_i32, %c0_i32_0 : i32, i32
  }
  func.func @transform_6(%arg0: i32) -> (i32, i32) {
    %c0_i32 = arith.constant 0 : i32
    %c0_i32_0 = arith.constant 0 : i32
    %c0_i32_1 = arith.constant 0 : i32
    return %c0_i32, %c0_i32_0 : i32, i32
  }
  func.func @transform_7(%arg0: i32) -> (i32, i32) {
    %c0_i32 = arith.constant 0 : i32
    %c0_i32_0 = arith.constant 0 : i32
    %c0_i32_1 = arith.constant 0 : i32
    return %c0_i32, %c0_i32_0 : i32, i32
  }
  func.func @transform_8(%arg0: i32) -> (i32, i32) {
    %c0_i32 = arith.constant 0 : i32
    %c0_i32_0 = arith.constant 0 : i32
    %c0_i32_1 = arith.constant 0 : i32
    return %c0_i32, %c0_i32_0 : i32, i32
  }
  func.func @transform_9(%arg0: i32) -> (i32, i32) {
    %c0_i32 = arith.constant 0 : i32
    %c0_i32_0 = arith.constant 0 : i32
    return %c0_i32, %arg0 : i32, i32
  }
}

</mosaic_0001>

<bundles_post_ra>
// kernel: tpu_custom_call.1
= control target key start
LH: loop header
LB: loop body
LE: loop exit
PB: predicated region body
PF: predicated region fallthrough
CT: control target
= control target key end

     0   :  { %v585_v2 = vmov 0.0|0.0   ;;  %vm586_vm0 = vmmov 0   ;;  %v587_v4 = vmov 0.0   ;;  %vm43_vm1 = vcmask 130048   ;;  %s771_s0 = inlined_call_operand.vmem [shape: f32[8,16], index: 0, kind: input, shape index: {}]   ;;  %s772_s1 = inlined_call_operand.vmem [shape: f32[16,64], index: 1, kind: input, shape index: {}]   ;;  %s773_s2 = inlined_call_operand.vmem [shape: f32[1,64], index: 2, kind: input, shape index: {}]   ;;  %s774_s3 = inlined_call_operand.vmem [shape: f32[64,128], index: 3, kind: input, shape index: {}]   ;;  %s775_s4 = inlined_call_operand.vmem [shape: f32[1,128], index: 4, kind: input, shape index: {}]   ;;  %s776_s5 = inlined_call_operand.vmem [shape: f32[128,32], index: 5, kind: input, shape index: {}]   ;;  %s777_s6 = inlined_call_operand.vmem [shape: f32[1,32], index: 6, kind: input, shape index: {}]   ;;  %s778_s7 = inlined_call_operand.vmem [shape: f32[2,32], index: 7, kind: input, shape index: {}]   ;;  %s779_s8 = inlined_call_operand.vmem [shape: f32[2,1], index: 8, kind: input, shape index: {}]   ;;  %s780_s9 = inlined_call_operand.hbm [shape: f32[2,8], index: 9, kind: output, shape index: {}]  }
   0x1   :  { %v34_v0 = vld [vmem:[%s772_s1] sm:$0xff]  ;;  %v35_v1 = vld [vmem:[%s772_s1 + $0x8] sm:$0xff]  ;;  %515 = vmatprep.subr.bf16.mxu1 %v585_v2  ;;  %453 = vmatprep.mubr.msk.f32.mxu1 %vm586_vm0, %v587_v4 }
   0x2   :  { %v516_v3 = vpack.c.bf16 %v35_v1, %v34_v0  ;;  %v118_v5 = vld [vmem:[%s774_s3] sm:$0xff]  ;;  %v119_v6 = vld [vmem:[%s774_s3 + $0x8] sm:$0xff]  ;;  %530 = vmatprep.subr.bf16.mxu0 %v585_v2  ;;  %507 = vmatprep.mubr.msk.f32.mxu0 %vm586_vm0, %v587_v4 }
   0x3   :  { %v33_v7 = vld [vmem:[%s771_s0] sm:$0xff]  ;;  %v519_v8 = vpack.c.bf16 %v119_v6, %v118_v5 }
   0x4   :  { %517 = vmatpush3.bf16.msra.mxu1 %v516_v3 }
   0x5   :  { %14 = vsyncpa [#allocation3], 0  ;;  %518 = vmatprep.subr.bf16.mxu1 %v585_v2  ;;  %v120_v9 = vld [vmem:[%s774_s3 + $0x10] sm:$0xff]  ;;  %v121_v10 = vld [vmem:[%s774_s3 + $0x18] sm:$0xff]  ;;  %vm133_vm2 = vcmask 523264   ;;  %v588_v53 = vmov 0   ;;  %v391_v61 = vlaneseq }
   0x6   :  { %v522_v11 = vpack.c.bf16 %v121_v10, %v120_v9  ;;  %v122_v12 = vld [vmem:[%s774_s3 + $0x20] sm:$0xff]  ;;  %v123_v13 = vld [vmem:[%s774_s3 + $0x28] sm:$0xff]  ;;  %v124_v15 = vld [vmem:[%s774_s3 + $0x30] sm:$0xff]  ;;  %560 = vset.pattern.permute.xlu0 %v588_v53  ;;  %vm309_vm3 = vcmask 261120   ;;  %vm395_vm6 = vcmask 58368  }
   0x7   :  { %454 = vmatmul.mubr.msk.f32.vlgmr.msra.gmra.mrb[0].mxu1 %vm43_vm1, %v33_v7  ;;  %v525_v14 = vpack.c.bf16 %v123_v13, %v122_v12  ;;  %v125_v16 = vld [vmem:[%s774_s3 + $0x38] sm:$0xff]  ;;  %v208_v18 = vld [vmem:[%s776_s5] sm:$0xff]  ;;  %v209_v19 = vld [vmem:[%s776_s5 + $0x8] sm:$0xff]  ;;  %v392_v1 = vshrl.u32 %v391_v61, 7 }
   0x8   :  { %520 = vmatpush3.bf16.msra.mxu1 %v519_v8  ;;  %472 = vmatprep.mubr.msk.f32.mxu1 %vm586_vm0, %v587_v4  ;;  %v528_v17 = vpack.c.bf16 %v125_v16, %v124_v15  ;;  %v210_v20 = vld [vmem:[%s776_s5 + $0x10] sm:$0xff]  ;;  %v531_v21 = vpack.c.bf16 %v209_v19, %v208_v18  ;;  %v211_v22 = vld [vmem:[%s776_s5 + $0x18] sm:$0xff]  ;;  %v212_v24 = vld [vmem:[%s776_s5 + $0x20] sm:$0xff] }
   0x9   :  { %521 = vmatprep.subr.bf16.mxu1 %v585_v2  ;;  %v534_v23 = vpack.c.bf16 %v211_v22, %v210_v20  ;;  %v213_v25 = vld [vmem:[%s776_s5 + $0x28] sm:$0xff]  ;;  %v214_v27 = vld [vmem:[%s776_s5 + $0x30] sm:$0xff]  ;;  %v215_v28 = vld [vmem:[%s776_s5 + $0x38] sm:$0xff]  ;;  %vm393_vm5 = vcmp.eq.s32.totalorder %v392_v1, 0 }
   0xa   :  { %532 = vmatpush3.bf16.msra.mxu0 %v531_v21  ;;  %v537_v26 = vpack.c.bf16 %v213_v25, %v212_v24  ;;  %v540_v29 = vpack.c.bf16 %v215_v28, %v214_v27  ;;  %v216_v30 = vld [vmem:[%s776_s5 + $0x40] sm:$0xff]  ;;  %v217_v31 = vld [vmem:[%s776_s5 + $0x48] sm:$0xff]  ;;  %v218_v33 = vld [vmem:[%s776_s5 + $0x50] sm:$0xff] }
   0xb   :  { %533 = vmatprep.subr.bf16.mxu0 %v585_v2  ;;  %v543_v32 = vpack.c.bf16 %v217_v31, %v216_v30  ;;  %v219_v34 = vld [vmem:[%s776_s5 + $0x58] sm:$0xff]  ;;  %v220_v36 = vld [vmem:[%s776_s5 + $0x60] sm:$0xff]  ;;  %v221_v37 = vld [vmem:[%s776_s5 + $0x68] sm:$0xff] }
   0xc   :  { %523 = vmatpush3.bf16.msra.mxu1 %v522_v11  ;;  %v546_v35 = vpack.c.bf16 %v219_v34, %v218_v33  ;;  %v549_v38 = vpack.c.bf16 %v221_v37, %v220_v36  ;;  %v411_v39 = vld [vmem:[%s773_s2] ss:$0 sm:$0xff]  ;;  %v222_v44 = vld [vmem:[%s776_s5 + $0x70] sm:$0xff]  ;;  %v223_v45 = vld [vmem:[%s776_s5 + $0x78] sm:$0xff] }
   0xd   :  { %524 = vmatprep.subr.bf16.mxu1 %v585_v2  ;;  %v552_v46 = vpack.c.bf16 %v223_v45, %v222_v44  ;;  %v413_v47 = vld [vmem:[%s775_s4] ss:$0 sm:$0xff] }
   0xe   :  { %535 = vmatpush3.bf16.msra.mxu0 %v534_v23  ;;  %v303_v52 = vld [vmem:[%s779_s8] sm:$0x3] }
   0xf   :  { %536 = vmatprep.subr.bf16.mxu0 %v585_v2  ;;  %306 = vperm.xlu0 %560, %v303_v52   ;;  %v415_v54 = vld [vmem:[%s777_s6] ss:$0 sm:$0xff]  ;;  %s589_s6 = smov [#allocation2]  }
  0x10   :  { %526 = vmatpush3.bf16.msra.mxu1 %v525_v14  ;;  %v302_v59 = vld [vmem:[%s778_s7] sm:$0x3]  ;;  %s403_s8 = sshll.u32 %s589_s6, 4  ;;  %s404_s8 = int_to_ptr.vmem [resolvable:$true] %s403_s8 }
  0x11   :  { %527 = vmatprep.subr.bf16.mxu1 %v585_v2  ;;  %s561_s7 = scalar_lea.vmem %s404_s8, 32  ;;  %p566_p1 = scmp.lt.s32.totalorder %s404_s8, %s404_s8 }
  0x12   :  { %538 = vmatpush3.bf16.msra.mxu0 %v537_v26  ;;  %p562_p0 = scmp.ne.s32.totalorder %s404_s8, %s561_s7  ;;  %p567_p2 = scmp.lt.s32.totalorder %s561_s7, %s561_s7 }
  0x13   :  { %539 = vmatprep.subr.bf16.mxu0 %v585_v2 }
  0x14   :  { %529 = vmatpush3.bf16.msra.mxu1 %v528_v17  ;;  %p568_p3 = por %p567_p2, %p566_p1 }
  0x15   :  { %510 = vmatprep.subr.mxu1 %v587_v4 }
  0x16   :  { %541 = vmatpush3.bf16.msra.mxu0 %v540_v29  ;;  %p569_p4 = pnand %p568_p3, %p562_p0 }
  0x17   :  { %542 = vmatprep.subr.bf16.mxu0 %v585_v2 }
  0x1a   :  { %544 = vmatpush3.bf16.msra.mxu0 %v543_v32 }
  0x1b   :  { %545 = vmatprep.subr.bf16.mxu0 %v585_v2 }
  0x1e   :  { %547 = vmatpush3.bf16.msra.mxu0 %v546_v35 }
  0x1f   :  { %548 = vmatprep.subr.bf16.mxu0 %v585_v2 }
  0x22   :  { %550 = vmatpush3.bf16.msra.mxu0 %v549_v38 }
  0x23   :  { %551 = vmatprep.subr.bf16.mxu0 %v585_v2 }
  0x26   :  { %553 = vmatpush3.bf16.msra.mxu0 %v552_v46 }
  0x8e   :  { %v307_v60 = vpop.permute.xlu0 %306 }
  0xda   :  { %v113_v40 = vpop.f32.mrb[0].mxu1 }
  0xdb   :  { %v114_v41 = vadd.f32 %v411_v39, %v113_v40  ;;  %v455_v42 = vpop.f32.mrb[1].mxu1 }
  0xdd   :  { %v117_v43 = vmax.f32 %v114_v41, 0.0 }
  0xdf   :  { %473 = vmatmul.mubr.msk.f32.vlgmr.msra.gmra.mrb[2].mxu1 %vm133_vm2, %v117_v43 }
  0xe0   :  { %512 = vmatprep.mubr.msk.f32.mxu1 %vm586_vm0, %v587_v4 }
 0x1b2   :  { %v203_v48 = vpop.f32.mrb[2].mxu1 }
 0x1b3   :  { %v204_v49 = vadd.f32 %v413_v47, %v203_v48  ;;  %v474_v50 = vpop.f32.mrb[3].mxu1 }
 0x1b5   :  { %v207_v51 = vmax.f32 %v204_v49, 0.0 }
 0x1b7   :  { %508 = vmatmul.mubr.f32.vlgmr.msra.gmra.mrb[0].mxu0 %v207_v51 }
 0x28a   :  { %v297_v55 = vpop.f32.mrb[0].mxu0 }
 0x28b   :  { %v298_v56 = vadd.f32 %v415_v54, %v297_v55  ;;  %v509_v57 = vpop.f32.mrb[1].mxu0 }
 0x28d   :  { %v301_v58 = vmax.f32 %v298_v56, 0.0 }
 0x28f   :  { %511 = vmatpush3.xpose.msk.msra.mxu1 %vm309_vm3, %v301_v58 }
 0x292   :  { %513 = vmatmul.mubr.msk.f32.vlgmr.msra.gmra.mrb[4].mxu1 %vm309_vm3, %v302_v59 }
 0x365   :  { %v382_v62 = vpop.f32.mrb[4].mxu1 }
 0x366   :  { %v383_v63 = vadd.f32 %v382_v62, %v307_v60  ;;  %v514_v0 = vpop.f32.mrb[5].mxu1 }
 0x368   :  { %v388_v2 = vmax.f32 %v383_v63, 0.0  ;;  %vm386_vm4 = vcmp.gt.f32.partialorder %v383_v63, 0.0 }
 0x369   :  { %v387_v6 = vsel %vm386_vm4, 1.0, %v587_v4 }
 0x36a   :  { %v389_v3 = vmin.f32 %v388_v2, 10.0 }
 0x36c   :  { %v554_v5 = vround.rtne.f32 %v389_v3 }
 0x36e   :  { %v394_v7 = vsel %vm393_vm5, %v387_v6, %v554_v5 }
 0x36f   :  { %396 = vst.msk [vmem:[#allocation2] sm:$0x3] %vm395_vm6, %v394_v7 }
 0x370   :  { %572 = shalt.err (!%p569_p4)
}
 0x371   :  { %s573_s22 = scalar_lea.hbm %s780_s9, 32 }
 0x372   :  { %p574_p5 = scmp.ne.s32.totalorder %s780_s9, %s573_s22  ;;  %p577_p6 = scmp.lt.u32.totalorder %s573_s22, %s780_s9 }
 0x374   :  { %p579_p7 = pnand %p577_p6, %p574_p5 }
 0x376   :  { %582 = shalt.err (!%p579_p7)
}
 0x377   :  { %406 = dma.vmem_to_hbm [thread:$0]  %s404_s8, 32, %s780_s9, [#allocation3]  }
 0x378   :  { %583 = dma.done.wait [#allocation3], 32  }
 0x379   :  { %584 = vsyncadd [#allocation3], 4294967264 }
 0x37a   :  { %410 = vsyncpa [#allocation3], 1 }

</bundles_post_ra>
